<compile_context>
chip_gen: v7x
topology: tpu7x:2x2x1
jax: 0.10.0
libtpu: 0.0.40
codegen_flags: <defaults>
</compile_context>

<pallas_src>
import functools
import math

import jax
import jax.numpy as jnp
from jax.experimental import pallas as pl
from jax.experimental.pallas import tpu as pltpu


def _embedding_gather_kernel(ids_ref, emb_hbm, out_ref, row_sems):
    """Gather one tile of embedding rows via per-row async DMAs.

    ids_ref : (n_pad,) int32 in SMEM (scalar-prefetched token ids)
    emb_hbm : (vocab, dim_pad) HBM ref (memory_space=ANY, manual DMA)
    out_ref : (tile, dim_pad) VMEM output block (direct DMA destination)
    row_sems: (nsem,) DMA semaphores, shared round-robin by the row copies
    """
    tile = out_ref.shape[0]
    nsem = row_sems.shape[0]
    base = pl.multiple_of(pl.program_id(0) * tile, tile)

    # Issue all row DMAs up front so they are all in flight concurrently.
    @pl.loop(0, tile)
    def _issue(t):
        row = ids_ref[base + t]
        pltpu.make_async_copy(
            emb_hbm.at[pl.ds(row, 1), :],
            out_ref.at[pl.ds(t, 1), :],
            row_sems.at[t % nsem],
        ).start()

    # Wait for every row copy. The descriptor only needs the same dst shape /
    # semaphore as the matching start (all copies have identical byte counts),
    # so a fixed dummy src row is fine here.
    @pl.loop(0, tile)
    def _wait(t):
        pltpu.make_async_copy(
            emb_hbm.at[pl.ds(0, 1), :],
            out_ref.at[pl.ds(t, 1), :],
            row_sems.at[t % nsem],
        ).wait()


@functools.partial(jax.jit, static_argnames=("tile",))
def embedding_lookup(x, embedding, *, tile=128):
    """x: int array of any shape; embedding: (vocab, dim). Returns x.shape + (dim,)."""
    orig_shape = x.shape
    vocab, dim = embedding.shape

    ids = x.reshape(-1).astype(jnp.int32)
    n = ids.shape[0]
    if n == 0:  # degenerate empty input
        return jnp.zeros((*orig_shape, dim), dtype=embedding.dtype)

    # Token tile: big enough to amortize ~0.35us/grid-step overhead and keep
    # many row DMAs in flight, but no larger than the (8-aligned) token count
    # so tiny inputs don't over-gather. Must stay a multiple of 8 (sublanes).
    tile = max(8, min(tile, ((n + 7) // 8) * 8))
    n_pad = ((n + tile - 1) // tile) * tile

    # Lane-dense output: pad dim up to a multiple of 128 (no-op when the model
    # dim is already 128-aligned, which is the common case).
    dim_pad = ((dim + 127) // 128) * 128

    if n_pad != n:
        ids = jnp.pad(ids, (0, n_pad - n))            # id 0 is a valid row
    emb = embedding
    if dim_pad != dim:
        emb = jnp.pad(embedding, ((0, 0), (0, dim_pad - dim)))

    nsem = min(tile, 16)  # DMA sems shared round-robin; all copies same size

    out = pl.pallas_call(
        _embedding_gather_kernel,
        out_shape=jax.ShapeDtypeStruct((n_pad, dim_pad), embedding.dtype),
        grid_spec=pltpu.PrefetchScalarGridSpec(
            num_scalar_prefetch=1,                    # ids -> SMEM
            grid=(n_pad // tile,),
            in_specs=[pl.BlockSpec(memory_space=pl.ANY)],   # table stays in HBM
            out_specs=pl.BlockSpec((tile, dim_pad), lambda i, ids_ref: (i, 0)),
            scratch_shapes=[
                pltpu.SemaphoreType.DMA((nsem,)),
            ],
        ),
        compiler_params=pltpu.CompilerParams(
            dimension_semantics=("parallel",),        # shards across TCs on v7x
        ),
    )(ids, emb)

    out = out[:n, :dim]
    return out.reshape(*orig_shape, dim)


def init_embedding(key, vocab_dim, dim, dtype=jnp.float32):
    # torch.nn.init.kaiming_uniform_(w, a=sqrt(5)) on a (vocab_dim, dim) tensor:
    # fan_in = dim, gain = sqrt(2/(1+5)) = sqrt(1/3),
    # bound = sqrt(3)*gain/sqrt(fan_in) = 1/sqrt(dim) -> U(-1/sqrt(dim), 1/sqrt(dim))
    bound = 1.0 / math.sqrt(dim)
    return jax.random.uniform(
        key, (vocab_dim, dim), dtype=dtype, minval=-bound, maxval=bound
    )


if __name__ == "__main__":
    key = jax.random.PRNGKey(0)
    k_emb, k_ids = jax.random.split(key)

    batch, seq = 2, 8
    vocab_dim, dim = 32, 32

    embedding = init_embedding(k_emb, vocab_dim, dim)
    x = jax.random.randint(k_ids, (batch, seq), 0, vocab_dim, dtype=jnp.int32)

    out = embedding_lookup(x, embedding)
    out = jax.block_until_ready(out)

    # Correctness check against plain-JAX gather (same semantics as torch's embedding[x]).
    ref = embedding[x]
    assert out.shape == (batch, seq, dim)
    assert jnp.array_equal(out, ref), "mismatch vs reference gather"

    print("KERNEL_OK")
</pallas_src>

<mosaic_0001>
module attributes {stable_mosaic.version = 11 : i64} {
  func.func @_embedding_gather_kernel(%arg0: i32, %arg1: memref<16xi32, #tpu.memory_space<smem>>, %arg2: memref<32x128xf32, #tpu.memory_space<any>>, %arg3: memref<16x128xf32, #tpu.memory_space<vmem>>, %arg4: memref<16x!tpu.dma_semaphore, #tpu.memory_space<semaphore_mem>>) attributes {dimension_semantics = [#tpu.dimension_semantics<parallel>], iteration_bounds = array<i64: 1>, scalar_prefetch = 1 : i64, scratch_operands = 1 : i64, tpu.core_type = #tpu.core_type<tc>, window_params = [{}, {transform_indices = @transform_1, window_bounds = array<i64: 16, 128>}]} {
    %c16_i32 = arith.constant 16 : i32
    %0 = arith.muli %arg0, %c16_i32 : i32
    %1 = tpu.assume_multiple %0, 16 : i32
    %c0_i32 = arith.constant 0 : i32
    %c16_i32_0 = arith.constant 16 : i32
    %2 = arith.addi %c0_i32, %c16_i32_0 : i32
    %c1_i32 = arith.constant 1 : i32
    scf.for %arg5 = %c0_i32 to %2 step %c1_i32  : i32 {
      %c1_i32_6 = arith.constant 1 : i32
      %4 = arith.muli %arg5, %c1_i32_6 : i32
      %c0_i32_7 = arith.constant 0 : i32
      %5 = arith.addi %c0_i32_7, %4 : i32
      %6 = arith.addi %1, %5 : i32
      %7 = arith.index_cast %6 : i32 to index
      %8 = memref.load %arg1[%7] : memref<16xi32, #tpu.memory_space<smem>>
      %c16_i32_8 = arith.constant 16 : i32
      %c0_i32_9 = arith.constant 0 : i32
      %9 = arith.cmpi eq, %c16_i32_8, %c0_i32_9 : i32
      %c1_i32_10 = arith.constant 1 : i32
      %10 = arith.select %9, %c1_i32_10, %c16_i32_8 : i32
      %11 = arith.remsi %5, %10 : i32
      %c0_i32_11 = arith.constant 0 : i32
      %12 = arith.cmpi ne, %11, %c0_i32_11 : i32
      %c0_i32_12 = arith.constant 0 : i32
      %13 = arith.cmpi slt, %11, %c0_i32_12 : i32
      %c0_i32_13 = arith.constant 0 : i32
      %14 = arith.cmpi slt, %10, %c0_i32_13 : i32
      %15 = arith.xori %13, %14 : i1
      %16 = arith.andi %15, %12 : i1
      %17 = arith.addi %11, %10 : i32
      %18 = arith.select %16, %17, %11 : i32
      %c0_i32_14 = arith.constant 0 : i32
      %19 = tpu.memref_slice %arg2[%8, %c0_i32_14] : memref<32x128xf32, #tpu.memory_space<any>> -> memref<1x128xf32, #tpu.memory_space<any>>
      %c0_i32_15 = arith.constant 0 : i32
      %20 = tpu.memref_slice %arg3[%5, %c0_i32_15] : memref<16x128xf32, #tpu.memory_space<vmem>> -> memref<1x128xf32, #tpu.memory_space<vmem>>
      %21 = tpu.memref_slice %arg4[%18] : memref<16x!tpu.dma_semaphore, #tpu.memory_space<semaphore_mem>> -> memref<1x!tpu.dma_semaphore, #tpu.memory_space<semaphore_mem>>
      %22 = tpu.memref_squeeze %21 : memref<1x!tpu.dma_semaphore, #tpu.memory_space<semaphore_mem>> -> memref<!tpu.dma_semaphore, #tpu.memory_space<semaphore_mem>>
      tpu.enqueue_dma source(%19 : memref<1x128xf32, #tpu.memory_space<any>>) target(%20 : memref<1x128xf32, #tpu.memory_space<vmem>>) target_semaphore(%22 : memref<!tpu.dma_semaphore, #tpu.memory_space<semaphore_mem>>)
    }
    %c16_i32_1 = arith.constant 16 : i32
    %c0_i32_2 = arith.constant 0 : i32
    %c16_i32_3 = arith.constant 16 : i32
    %3 = arith.addi %c0_i32_2, %c16_i32_3 : i32
    %c1_i32_4 = arith.constant 1 : i32
    scf.for %arg5 = %c0_i32_2 to %3 step %c1_i32_4  : i32 {
      %c1_i32_6 = arith.constant 1 : i32
      %4 = arith.muli %arg5, %c1_i32_6 : i32
      %c0_i32_7 = arith.constant 0 : i32
      %5 = arith.addi %c0_i32_7, %4 : i32
      %c16_i32_8 = arith.constant 16 : i32
      %c0_i32_9 = arith.constant 0 : i32
      %6 = arith.cmpi eq, %c16_i32_8, %c0_i32_9 : i32
      %c1_i32_10 = arith.constant 1 : i32
      %7 = arith.select %6, %c1_i32_10, %c16_i32_8 : i32
      %8 = arith.remsi %5, %7 : i32
      %c0_i32_11 = arith.constant 0 : i32
      %9 = arith.cmpi ne, %8, %c0_i32_11 : i32
      %c0_i32_12 = arith.constant 0 : i32
      %10 = arith.cmpi slt, %8, %c0_i32_12 : i32
      %c0_i32_13 = arith.constant 0 : i32
      %11 = arith.cmpi slt, %7, %c0_i32_13 : i32
      %12 = arith.xori %10, %11 : i1
      %13 = arith.andi %12, %9 : i1
      %14 = arith.addi %8, %7 : i32
      %15 = arith.select %13, %14, %8 : i32
      %c0_i32_14 = arith.constant 0 : i32
      %c0_i32_15 = arith.constant 0 : i32
      %16 = tpu.memref_slice %arg2[%c0_i32_14, %c0_i32_15] : memref<32x128xf32, #tpu.memory_space<any>> -> memref<1x128xf32, #tpu.memory_space<any>>
      %c0_i32_16 = arith.constant 0 : i32
      %17 = tpu.memref_slice %arg3[%5, %c0_i32_16] : memref<16x128xf32, #tpu.memory_space<vmem>> -> memref<1x128xf32, #tpu.memory_space<vmem>>
      %18 = tpu.memref_slice %arg4[%15] : memref<16x!tpu.dma_semaphore, #tpu.memory_space<semaphore_mem>> -> memref<1x!tpu.dma_semaphore, #tpu.memory_space<semaphore_mem>>
      %19 = tpu.memref_squeeze %18 : memref<1x!tpu.dma_semaphore, #tpu.memory_space<semaphore_mem>> -> memref<!tpu.dma_semaphore, #tpu.memory_space<semaphore_mem>>
      tpu.wait_dma2 semaphore(%19 : memref<!tpu.dma_semaphore, #tpu.memory_space<semaphore_mem>>) src(%16 : memref<1x128xf32, #tpu.memory_space<any>>) dst(%17 : memref<1x128xf32, #tpu.memory_space<vmem>>)
    }
    %c16_i32_5 = arith.constant 16 : i32
    return
  }
  func.func @transform_1(%arg0: i32, %arg1: memref<16xi32, #tpu.memory_space<smem>>) -> (i32, i32) {
    %c0_i32 = arith.constant 0 : i32
    %c0_i32_0 = arith.constant 0 : i32
    return %arg0, %c0_i32 : i32, i32
  }
}

</mosaic_0001>

<bundles_post_ra>
// kernel: embedding_lookup.1
= control target key start
LH: loop header
LB: loop body
LE: loop exit
PB: predicated region body
PF: predicated region fallthrough
CT: control target
= control target key end

     0   :  { %s338_s0 = inlined_call_operand.vmem [shape: s32[16], index: 0, kind: input, shape index: {}]   ;;  %s339_s1 = inlined_call_operand.vmem [shape: f32[32,128], index: 1, kind: input, shape index: {}]   ;;  %s340_s2 = inlined_call_operand.vmem [shape: f32[16,128], index: 2, kind: output, shape index: {}]  }
   0x1   :  { %s7_s11 = sshll.u32 %s338_s0, 4  ;;  %s8_s11 = int_to_ptr.vmem [resolvable:$true] %s7_s11 }
   0x2   :  { %s281_s12 = scalar_lea.vmem %s8_s11, 16  ;;  %p286_p1 = scmp.lt.s32.totalorder %s8_s11, %s8_s11 }
   0x3   :  { %p282_p0 = scmp.ne.s32.totalorder %s8_s11, %s281_s12  ;;  %p287_p2 = scmp.lt.s32.totalorder %s281_s12, %s281_s12 }
   0x5   :  { %p288_p3 = por %p287_p2, %p286_p1 }
   0x7   :  { %p289_p4 = pnand %p288_p3, %p282_p0 }
   0x9   :  { %292 = shalt.err (!%p289_p4)  }
   0xa   :  { %s313_s13 = smov [#allocation4]  }
   0xb   :  { %10 = dma.vmem_to_smem %s8_s11, 16, %s313_s13, [#allocation3] }
   0xc   :  { %301 = dma.done.wait [#allocation3], 16 }
   0xd   :  { %302 = vsyncadd [#allocation3], 4294967280 }
   0xe   :  { %12 = sfence }
   0xf   :  { %s305_s14 = smov 0  }
  0x10 LB: > { %s21_s15 = sld [smem:[#allocation4 + %s307_s14]]  ;;  %p22_p5 = scmp.lt.s32.totalorder %s307_s14, 0  ;;  %s307_s14 = sphi %s305_s14, %s19_s14  }
  0x11   : > { %s23_s0 = ssub.s32 0, %s307_s14  ;;  %s35_s21 = scalar_lea.vmem %s340_s2, %s307_s14 }
  0x12   : > { %s242_s16 = smin.u32 %s307_s14, %s23_s0 }
  0x13   : > { %s25_s17 = sand.u32 15, %s242_s16  }
  0x14   : > { %s26_s18 = ssub.s32 0, %s25_s17 }
  0x15   : > { %s342_s18 = smov (!%p22_p5, %s26_s18), %s25_s17 }
  0x16   : > { %s34_s24 = scalar_lea.vmem %s339_s1, %s21_s15  ;;  %p244_p6 = scmp.lt.s32.totalorder %s342_s18, 0 }
  0x17   : > { %s32_s25 = sadd.s32 16, %s342_s18  ;;  %v54_v0 = vld [vmem:[%s34_s24] sm:$0x1] }
  0x18   : > { %55 = vst [vmem:[%s35_s21] sm:$0x1] %v54_v0  ;;  %s344_s25 = smov (!%p244_p6, %s32_s25), %s342_s18 }
  0x19   : > { %s36_s26 = scalar_lea.sflag [#allocation2], %s344_s25 }
  0x1a   : > { %80 = vsyncadd %s36_s26, 16  ;;  %s19_s14 = sadd.s32 1, %s307_s14  }
  0x1b   : > { %p16_p7 = scmp.ge.s32.totalorder %s19_s14, 16  }
  0x1c   :  { %s309_s27 = smov (%p16_p7), 0  }
  0x1d   :  { %18 = sbr.rel (!%p16_p7) target bundleno = 16 (0x10), region = 93 }
  0x24 LB: > { %p87_p8 = scmp.lt.s32.totalorder %s311_s27, 0  ;;  %s88_s28 = ssub.s32 0, %s311_s27  ;;  %s311_s27 = sphi %s309_s27, %s86_s27  }
  0x25   : > { %s245_s29 = smin.u32 %s311_s27, %s88_s28 }
  0x26   : > { %s90_s30 = sand.u32 15, %s245_s29  }
  0x27   : > { %s91_s3 = ssub.s32 0, %s90_s30 }
  0x28   : > { %s346_s3 = smov (!%p87_p8, %s91_s3), %s90_s30 }
  0x29   : > { %p247_p9 = scmp.lt.s32.totalorder %s346_s3, 0  ;;  %s97_s4 = sadd.s32 16, %s346_s3 }
  0x2b   : > { %s348_s4 = smov (!%p247_p9, %s97_s4), %s346_s3 }
  0x2c   : > { %s99_s5 = scalar_lea.sflag [#allocation2], %s348_s4 }
  0x2d   : > { %303 = dma.done.wait %s99_s5, 16 }
  0x2e   : > { %304 = vsyncadd %s99_s5, 4294967280  ;;  %s86_s27 = sadd.s32 1, %s311_s27  }
  0x2f   : > { %p83_p10 = scmp.ge.s32.totalorder %s86_s27, 16  }
  0x31   :  { %85 = sbr.rel (!%p83_p10) target bundleno = 36 (0x24), region = 104 }
  0x38   :  { %107 = vsyncmov [#allocation2] }
  0x3b   :  { %s108_s1 = vpop.sfrf %107 }
  0x3c   :  { %p248_p11 = scmp.ne.s32.totalorder %s108_s1, 0 }
  0x3e   :  { %112 = shalt.err (%p248_p11)  }
  0x3f   :  { %114 = vsyncmov [#allocation2 + $0x1] }
  0x42   :  { %s115_s2 = vpop.sfrf %114 }
  0x43   :  { %p249_p12 = scmp.ne.s32.totalorder %s115_s2, 0 }
  0x45   :  { %119 = shalt.err (%p249_p12)  }
  0x46   :  { %121 = vsyncmov [#allocation2 + $0x2] }
  0x49   :  { %s122_s6 = vpop.sfrf %121 }
  0x4a   :  { %p250_p13 = scmp.ne.s32.totalorder %s122_s6, 0 }
  0x4c   :  { %126 = shalt.err (%p250_p13)  }
  0x4d   :  { %128 = vsyncmov [#allocation2 + $0x3] }
  0x50   :  { %s129_s7 = vpop.sfrf %128 }
  0x51   :  { %p251_p0 = scmp.ne.s32.totalorder %s129_s7, 0 }
  0x53   :  { %133 = shalt.err (%p251_p0)  }
  0x54   :  { %135 = vsyncmov [#allocation2 + $0x4] }
  0x57   :  { %s136_s8 = vpop.sfrf %135 }
  0x58   :  { %p252_p1 = scmp.ne.s32.totalorder %s136_s8, 0 }
  0x5a   :  { %140 = shalt.err (%p252_p1)  }
  0x5b   :  { %142 = vsyncmov [#allocation2 + $0x5] }
  0x5e   :  { %s143_s9 = vpop.sfrf %142 }
  0x5f   :  { %p253_p2 = scmp.ne.s32.totalorder %s143_s9, 0 }
  0x61   :  { %147 = shalt.err (%p253_p2)  }
  0x62   :  { %149 = vsyncmov [#allocation2 + $0x6] }
  0x65   :  { %s150_s10 = vpop.sfrf %149 }
  0x66   :  { %p254_p3 = scmp.ne.s32.totalorder %s150_s10, 0 }
  0x68   :  { %154 = shalt.err (%p254_p3)  }
  0x69   :  { %156 = vsyncmov [#allocation2 + $0x7] }
  0x6c   :  { %s157_s11 = vpop.sfrf %156 }
  0x6d   :  { %p255_p4 = scmp.ne.s32.totalorder %s157_s11, 0 }
  0x6f   :  { %161 = shalt.err (%p255_p4)  }
  0x70   :  { %163 = vsyncmov [#allocation2 + $0x8] }
  0x73   :  { %s164_s12 = vpop.sfrf %163 }
  0x74   :  { %p256_p5 = scmp.ne.s32.totalorder %s164_s12, 0 }
  0x76   :  { %168 = shalt.err (%p256_p5)  }
  0x77   :  { %170 = vsyncmov [#allocation2 + $0x9] }
  0x7a   :  { %s171_s13 = vpop.sfrf %170 }
  0x7b   :  { %p257_p6 = scmp.ne.s32.totalorder %s171_s13, 0 }
  0x7d   :  { %175 = shalt.err (%p257_p6)  }
  0x7e   :  { %177 = vsyncmov [#allocation2 + $0xa] }
  0x81   :  { %s178_s14 = vpop.sfrf %177 }
  0x82   :  { %p258_p7 = scmp.ne.s32.totalorder %s178_s14, 0 }
  0x84   :  { %182 = shalt.err (%p258_p7)  }
  0x85   :  { %184 = vsyncmov [#allocation2 + $0xb] }
  0x88   :  { %s185_s15 = vpop.sfrf %184 }
  0x89   :  { %p259_p8 = scmp.ne.s32.totalorder %s185_s15, 0 }
  0x8b   :  { %189 = shalt.err (%p259_p8)  }
  0x8c   :  { %191 = vsyncmov [#allocation2 + $0xc] }
  0x8f   :  { %s192_s0 = vpop.sfrf %191 }
  0x90   :  { %p260_p9 = scmp.ne.s32.totalorder %s192_s0, 0 }
  0x92   :  { %196 = shalt.err (%p260_p9)  }
  0x93   :  { %198 = vsyncmov [#allocation2 + $0xd] }
  0x96   :  { %s199_s16 = vpop.sfrf %198 }
  0x97   :  { %p261_p10 = scmp.ne.s32.totalorder %s199_s16, 0 }
  0x99   :  { %203 = shalt.err (%p261_p10)  }
  0x9a   :  { %205 = vsyncmov [#allocation2 + $0xe] }
  0x9d   :  { %s206_s17 = vpop.sfrf %205 }
  0x9e   :  { %p262_p11 = scmp.ne.s32.totalorder %s206_s17, 0 }
  0xa0   :  { %210 = shalt.err (%p262_p11)  }
  0xa1   :  { %212 = vsyncmov [#allocation2 + $0xf] }
  0xa4   :  { %s213_s18 = vpop.sfrf %212 }
  0xa5   :  { %p263_p12 = scmp.ne.s32.totalorder %s213_s18, 0 }
  0xa7   :  { %217 = shalt.err (%p263_p12)  }

</bundles_post_ra>
